<compile_context>
chip_gen: v6e
topology: v6e:2x2x1
jax: 0.10.0
libtpu: 0.0.40
codegen_flags: <defaults>
</compile_context>

<pallas_src>
import math

import jax
import jax.numpy as jnp
from jax import lax
from jax.experimental import pallas as pl
from jax.experimental.pallas import tpu as pltpu

EPS = 1e-5
NEG_SLOPE = 0.2


def _round_up(x, m):
    return (x + m - 1) // m * m


def _make_kernel(pw, ws, p_valid):
    """pw = Ho*(Wo+1) padded output rows, ws = Wo+1, p_valid = Ho*Wo."""

    def kernel(x_ref, w_ref, m_ref, o_ref):
        # x_ref : (R, Kc)      bf16  flattened space-to-depth input (R >= pw + ws + 2)
        # w_ref : (4, Kc, CT)  bf16  per-tap weights for this C_out tile
        # m_ref : (pw, 1)      f32   1.0 on valid output rows, 0.0 on throw-away rows
        # o_ref : (pw, CT)     f32
        xs = x_ref[...]                                    # one aligned full load
        conv = None
        for a in range(2):                                 # super-row tap
            for b in range(2):                             # super-col tap
                off = a * ws + b
                # (R, CT) fp32 on the MXU; shift/align in the fp32 result.
                ys = jnp.dot(xs, w_ref[a * 2 + b],
                             preferred_element_type=jnp.float32)
                part = ys[off:off + pw, :]                 # static fp32 shift
                conv = part if conv is None else conv + part

        mask = m_ref[...]                                  # (pw, 1)
        inv_p = 1.0 / float(p_valid)
        # InstanceNorm2d: per-channel mean / biased variance over the Ho*Wo
        # valid spatial positions only (throw-away rows masked out).
        mean = jnp.sum(conv * mask, axis=0, keepdims=True) * inv_p       # (1, CT)
        cent = conv - mean
        var = jnp.sum(cent * cent * mask, axis=0, keepdims=True) * inv_p
        normed = cent * lax.rsqrt(var + EPS)
        # LeakyReLU(0.2) as a single max.
        o_ref[...] = jnp.maximum(normed, NEG_SLOPE * normed).astype(o_ref.dtype)

    return kernel


def cnn_block(x, weight):
    """x: (N, C_in, H, W) NCHW fp32; weight: (C_out, C_in, 4, 4) OIHW fp32
    -> (N, C_out, H//2, W//2) NCHW fp32."""
    # TODO(synk): only the default stride=2 CNNBlock path is implemented
    # (the stride=1 variant used by the last pix2pix block is not).
    N, C_in, H, W = x.shape
    C_out = weight.shape[0]
    assert H % 2 == 0 and W % 2 == 0, "stride-2 4x4 conv path assumes even H, W"

    Ho, Wo = H // 2, W // 2
    Hs, Ws = Ho + 1, Wo + 1          # space-to-depth super-grid of the padded input
    Kc = 4 * C_in                    # per-tap contraction length
    PW = Ho * Ws                     # padded output rows (one throw-away col per row)
    P = Ho * Wo                      # valid output positions

    # ---- layout prep (one cheap pass, ~input-sized; no im2col blow-up) ----
    xq = jnp.transpose(x, (0, 2, 3, 1))                        # NHWC
    xq = jnp.pad(xq, ((0, 0), (1, 1), (1, 1), (0, 0)))         # spatial pad 1
    xs2d = (xq.reshape(N, Hs, 2, Ws, 2, C_in)
              .transpose(0, 1, 3, 2, 4, 5)
              .reshape(N, Hs, Ws, Kc))                         # k = pr*2C + pc*C + c
    R = _round_up(Hs * Ws + 1, 16)                             # taps over-read <= Ws+1 rows
    x_flat = xs2d.reshape(N, Hs * Ws, Kc)
    x_flat = jnp.pad(x_flat, ((0, 0), (0, R - Hs * Ws), (0, 0))).astype(jnp.bfloat16)

    # Weights -> (4 taps, Kc, C_out_pad) matching the space-to-depth channel order.
    c_pad = _round_up(C_out, 128)                              # lane-dense output
    CT = 256 if c_pad % 256 == 0 else 128                      # MXU-shaped N tile
    wt = jnp.transpose(weight, (2, 3, 1, 0))                   # (4,4,C_in,C_out) = [ki,kj,c,o]
    wt = wt.reshape(2, 2, 2, 2, C_in, C_out)                   # [a, pr, b, pc, c, o]
    wt = wt.transpose(0, 2, 1, 3, 4, 5)                        # [a, b, pr, pc, c, o]
    w4 = wt.reshape(4, Kc, C_out)                              # tap index t = a*2 + b
    w4 = jnp.pad(w4, ((0, 0), (0, 0), (0, c_pad - C_out))).astype(jnp.bfloat16)

    # Valid-row mask for the InstanceNorm statistics.
    mask = ((jnp.arange(PW) % Ws) < Wo).astype(jnp.float32).reshape(PW, 1)

    kernel = _make_kernel(PW, Ws, P)

    # VMEM budgeting: only raise the scoped limit for large (real pix2pix)
    # shapes; the demo shape stays on compiler defaults.
    vmem_est = (2 * R * Kc * 2 + 2 * 4 * Kc * CT * 2 + 2 * PW * 4
                + 2 * PW * CT * 4 + 2 * R * CT * 4)
    cp = dict(dimension_semantics=("parallel", "parallel"))
    if vmem_est > 12 * 1024 * 1024:
        cp["vmem_limit_bytes"] = int(min(vmem_est * 3 // 2, 64 * 1024 * 1024))

    out = pl.pallas_call(
        kernel,
        out_shape=jax.ShapeDtypeStruct((N, PW, c_pad), jnp.float32),
        grid_spec=pltpu.PrefetchScalarGridSpec(
            num_scalar_prefetch=0,
            grid=(N, c_pad // CT),
            in_specs=[
                pl.BlockSpec((None, R, Kc), lambda n, c: (n, 0, 0)),
                pl.BlockSpec((4, Kc, CT), lambda n, c: (0, 0, c)),
                pl.BlockSpec((PW, 1), lambda n, c: (0, 0)),
            ],
            out_specs=pl.BlockSpec((None, PW, CT), lambda n, c: (n, 0, c)),
        ),
        compiler_params=pltpu.CompilerParams(**cp),
    )(x_flat, w4, mask)

    # Drop channel padding + the per-row throw-away column, back to NCHW.
    # TODO(synk): when chaining CNNBlocks, keep the (N, P, C) layout and feed the
    # next block directly instead of paying this transpose.
    out = out[:, :, :C_out].reshape(N, Ho, Ws, C_out)[:, :, :Wo, :]
    return jnp.transpose(out, (0, 3, 1, 2))


def _reference(x, weight):
    """Pure-JAX reference matching the PyTorch module (fp32)."""
    conv = lax.conv_general_dilated(
        x, weight, window_strides=(2, 2), padding=((1, 1), (1, 1)),
        dimension_numbers=("NCHW", "OIHW", "NCHW"))
    mean = jnp.mean(conv, axis=(2, 3), keepdims=True)
    var = jnp.mean((conv - mean) ** 2, axis=(2, 3), keepdims=True)
    normed = (conv - mean) / jnp.sqrt(var + EPS)
    return jnp.where(normed >= 0, normed, NEG_SLOPE * normed)


if __name__ == "__main__":
    key = jax.random.PRNGKey(0)
    kx, kw = jax.random.split(key)

    N, C_in, H, W = 2, 4, 16, 16
    C_out = 8

    x = jax.random.normal(kx, (N, C_in, H, W), dtype=jnp.float32)
    # Deterministic Conv2d-style init: U(-1/sqrt(fan_in), 1/sqrt(fan_in))
    fan_in = C_in * 4 * 4
    bound = 1.0 / math.sqrt(fan_in)
    weight = jax.random.uniform(kw, (C_out, C_in, 4, 4), jnp.float32,
                                minval=-bound, maxval=bound)

    out = jax.block_until_ready(cnn_block(x, weight))

    # Exact-path check: same bf16 input rounding as the kernel, fp32 conv.
    ref_bf16 = _reference(x.astype(jnp.bfloat16).astype(jnp.float32),
                          weight.astype(jnp.bfloat16).astype(jnp.float32))
    # Full-precision reference (loosened tolerance due to bf16 MXU inputs).
    ref_f32 = _reference(x, weight)

    assert out.shape == (N, C_out, H // 2, W // 2), out.shape
    err_exact = float(jnp.max(jnp.abs(out - ref_bf16)))
    err_full = float(jnp.max(jnp.abs(out - ref_f32)))
    assert err_exact < 5e-3, f"max abs err vs bf16-input reference = {err_exact}"
    assert err_full < 1e-1, f"max abs err vs fp32 reference = {err_full}"

    print("KERNEL_OK")
</pallas_src>

<mosaic_0001>
module attributes {stable_mosaic.version = 11 : i64} {
  func.func @kernel(%arg0: i32, %arg1: i32, %arg2: memref<1x96x16xbf16, #tpu.memory_space<vmem>>, %arg3: memref<4x16x128xbf16, #tpu.memory_space<vmem>>, %arg4: memref<72x1xf32, #tpu.memory_space<vmem>>, %arg5: memref<1x72x128xf32, #tpu.memory_space<vmem>>) attributes {dimension_semantics = [#tpu.dimension_semantics<parallel>, #tpu.dimension_semantics<parallel>], iteration_bounds = array<i64: 2, 1>, scalar_prefetch = 0 : i64, scratch_operands = 0 : i64, tpu.core_type = #tpu.core_type<tc>, window_params = [{transform_indices = @transform_0, window_bounds = array<i64: 1, 96, 16>}, {transform_indices = @transform_1, window_bounds = array<i64: 4, 16, 128>}, {pipeline_mode = #tpu.pipeline_mode<synchronous>, transform_indices = @transform_2, window_bounds = array<i64: 72, 1>}, {transform_indices = @transform_3, window_bounds = array<i64: 1, 72, 128>}]} {
    %c0 = arith.constant 0 : index
    %c0_0 = arith.constant 0 : index
    %c0_1 = arith.constant 0 : index
    %0 = vector.load %arg2[%c0, %c0_0, %c0_1] : memref<1x96x16xbf16, #tpu.memory_space<vmem>>, vector<1x96x16xbf16>
    %1 = vector.shape_cast %0 : vector<1x96x16xbf16> to vector<96x16xbf16>
    %c0_2 = arith.constant 0 : index
    %c0_3 = arith.constant 0 : index
    %c0_4 = arith.constant 0 : index
    %2 = vector.load %arg3[%c0_2, %c0_3, %c0_4] : memref<4x16x128xbf16, #tpu.memory_space<vmem>>, vector<1x16x128xbf16>
    %3 = vector.shape_cast %2 : vector<1x16x128xbf16> to vector<16x128xbf16>
    %cst = arith.constant dense<0.000000e+00> : vector<96x128xf32>
    %4 = tpu.matmul %1, %3, %cst {dimension_numbers = #tpu.dot_dimension_numbers<[1], [0], [0], [1], [0, 0, 1, 1], [], []>} : vector<96x16xbf16>, vector<16x128xbf16>, vector<96x128xf32> -> vector<96x128xf32>
    %5 = vector.extract_strided_slice %4 {offsets = [0, 0], sizes = [72, 128], strides = [1, 1]} : vector<96x128xf32> to vector<72x128xf32>
    %c1 = arith.constant 1 : index
    %c0_5 = arith.constant 0 : index
    %c0_6 = arith.constant 0 : index
    %6 = vector.load %arg3[%c1, %c0_5, %c0_6] : memref<4x16x128xbf16, #tpu.memory_space<vmem>>, vector<1x16x128xbf16>
    %7 = vector.shape_cast %6 : vector<1x16x128xbf16> to vector<16x128xbf16>
    %cst_7 = arith.constant dense<0.000000e+00> : vector<96x128xf32>
    %8 = tpu.matmul %1, %7, %cst_7 {dimension_numbers = #tpu.dot_dimension_numbers<[1], [0], [0], [1], [0, 0, 1, 1], [], []>} : vector<96x16xbf16>, vector<16x128xbf16>, vector<96x128xf32> -> vector<96x128xf32>
    %9 = vector.extract_strided_slice %8 {offsets = [1, 0], sizes = [72, 128], strides = [1, 1]} : vector<96x128xf32> to vector<72x128xf32>
    %10 = arith.addf %5, %9 : vector<72x128xf32>
    %c2 = arith.constant 2 : index
    %c0_8 = arith.constant 0 : index
    %c0_9 = arith.constant 0 : index
    %11 = vector.load %arg3[%c2, %c0_8, %c0_9] : memref<4x16x128xbf16, #tpu.memory_space<vmem>>, vector<1x16x128xbf16>
    %12 = vector.shape_cast %11 : vector<1x16x128xbf16> to vector<16x128xbf16>
    %cst_10 = arith.constant dense<0.000000e+00> : vector<96x128xf32>
    %13 = tpu.matmul %1, %12, %cst_10 {dimension_numbers = #tpu.dot_dimension_numbers<[1], [0], [0], [1], [0, 0, 1, 1], [], []>} : vector<96x16xbf16>, vector<16x128xbf16>, vector<96x128xf32> -> vector<96x128xf32>
    %14 = vector.extract_strided_slice %13 {offsets = [9, 0], sizes = [72, 128], strides = [1, 1]} : vector<96x128xf32> to vector<72x128xf32>
    %15 = arith.addf %10, %14 : vector<72x128xf32>
    %c3 = arith.constant 3 : index
    %c0_11 = arith.constant 0 : index
    %c0_12 = arith.constant 0 : index
    %16 = vector.load %arg3[%c3, %c0_11, %c0_12] : memref<4x16x128xbf16, #tpu.memory_space<vmem>>, vector<1x16x128xbf16>
    %17 = vector.shape_cast %16 : vector<1x16x128xbf16> to vector<16x128xbf16>
    %cst_13 = arith.constant dense<0.000000e+00> : vector<96x128xf32>
    %18 = tpu.matmul %1, %17, %cst_13 {dimension_numbers = #tpu.dot_dimension_numbers<[1], [0], [0], [1], [0, 0, 1, 1], [], []>} : vector<96x16xbf16>, vector<16x128xbf16>, vector<96x128xf32> -> vector<96x128xf32>
    %19 = vector.extract_strided_slice %18 {offsets = [10, 0], sizes = [72, 128], strides = [1, 1]} : vector<96x128xf32> to vector<72x128xf32>
    %20 = arith.addf %15, %19 : vector<72x128xf32>
    %c0_14 = arith.constant 0 : index
    %c0_15 = arith.constant 0 : index
    %21 = vector.load %arg4[%c0_14, %c0_15] : memref<72x1xf32, #tpu.memory_space<vmem>>, vector<72x1xf32>
    %22 = vector.broadcast %21 : vector<72x1xf32> to vector<72x128xf32>
    %23 = arith.mulf %20, %22 : vector<72x128xf32>
    %cst_16 = arith.constant dense<0.000000e+00> : vector<128xf32>
    %24 = vector.multi_reduction <add>, %23, %cst_16 [0] : vector<72x128xf32> to vector<128xf32>
    %25 = vector.shape_cast %24 : vector<128xf32> to vector<1x128xf32>
    %cst_17 = arith.constant 1.562500e-02 : f32
    %26 = vector.broadcast %cst_17 : f32 to vector<1x128xf32>
    %27 = arith.mulf %25, %26 : vector<1x128xf32>
    %28 = vector.broadcast %27 : vector<1x128xf32> to vector<72x128xf32>
    %29 = arith.subf %20, %28 : vector<72x128xf32>
    %30 = arith.mulf %29, %29 : vector<72x128xf32>
    %31 = vector.broadcast %21 : vector<72x1xf32> to vector<72x128xf32>
    %32 = arith.mulf %30, %31 : vector<72x128xf32>
    %cst_18 = arith.constant dense<0.000000e+00> : vector<128xf32>
    %33 = vector.multi_reduction <add>, %32, %cst_18 [0] : vector<72x128xf32> to vector<128xf32>
    %34 = vector.shape_cast %33 : vector<128xf32> to vector<1x128xf32>
    %cst_19 = arith.constant 1.562500e-02 : f32
    %35 = vector.broadcast %cst_19 : f32 to vector<1x128xf32>
    %36 = arith.mulf %34, %35 : vector<1x128xf32>
    %cst_20 = arith.constant 9.99999974E-6 : f32
    %37 = vector.broadcast %cst_20 : f32 to vector<1x128xf32>
    %38 = arith.addf %36, %37 : vector<1x128xf32>
    %39 = math.rsqrt %38 : vector<1x128xf32>
    %40 = vector.broadcast %39 : vector<1x128xf32> to vector<72x128xf32>
    %41 = arith.mulf %29, %40 : vector<72x128xf32>
    %cst_21 = arith.constant 2.000000e-01 : f32
    %42 = vector.broadcast %cst_21 : f32 to vector<72x128xf32>
    %43 = arith.mulf %42, %41 : vector<72x128xf32>
    %44 = arith.maximumf %41, %43 : vector<72x128xf32>
    %c0_22 = arith.constant 0 : index
    %c0_23 = arith.constant 0 : index
    %c0_24 = arith.constant 0 : index
    %45 = vector.load %arg5[%c0_22, %c0_23, %c0_24] : memref<1x72x128xf32, #tpu.memory_space<vmem>>, vector<1x72x128xf32>
    %46 = vector.shape_cast %45 : vector<1x72x128xf32> to vector<72x128xf32>
    %47 = vector.shape_cast %44 : vector<72x128xf32> to vector<1x72x128xf32>
    tpu.vector_store %arg5[%c0_22, %c0_23, %c0_24], %47 {strides = array<i32>} : memref<1x72x128xf32, #tpu.memory_space<vmem>>, vector<1x72x128xf32>,
    return
  }
  func.func @transform_0(%arg0: i32, %arg1: i32) -> (i32, i32, i32) {
    %c0_i32 = arith.constant 0 : i32
    %c0_i32_0 = arith.constant 0 : i32
    %c0_i32_1 = arith.constant 0 : i32
    return %arg0, %c0_i32, %c0_i32_0 : i32, i32, i32
  }
  func.func @transform_1(%arg0: i32, %arg1: i32) -> (i32, i32, i32) {
    %c0_i32 = arith.constant 0 : i32
    %c0_i32_0 = arith.constant 0 : i32
    %c0_i32_1 = arith.constant 0 : i32
    return %c0_i32, %c0_i32_0, %arg1 : i32, i32, i32
  }
  func.func @transform_2(%arg0: i32, %arg1: i32) -> (i32, i32) {
    %c0_i32 = arith.constant 0 : i32
    %c0_i32_0 = arith.constant 0 : i32
    %c0_i32_1 = arith.constant 0 : i32
    return %c0_i32, %c0_i32_0 : i32, i32
  }
  func.func @transform_3(%arg0: i32, %arg1: i32) -> (i32, i32, i32) {
    %c0_i32 = arith.constant 0 : i32
    %c0_i32_0 = arith.constant 0 : i32
    return %arg0, %c0_i32, %arg1 : i32, i32, i32
  }
}

</mosaic_0001>

<bundles_post_ra>
// kernel: tpu_custom_call.1
= control target key start
LH: loop header
LB: loop body
LE: loop exit
PB: predicated region body
PF: predicated region fallthrough
CT: control target
= control target key end

     0   :  { %8 = vsyncpa [#allocation3], 0  ;;  %s1619_s0 = inlined_call_operand.vmem [shape: bf16[2,96,16], index: 0, kind: input, shape index: {}]   ;;  %s1620_s1 = inlined_call_operand.vmem [shape: bf16[4,16,128], index: 1, kind: input, shape index: {}]   ;;  %s1621_s2 = inlined_call_operand.vmem [shape: f32[72,1], index: 2, kind: input, shape index: {}]   ;;  %s1622_s3 = inlined_call_operand.hbm [shape: f32[2,72,128], index: 3, kind: output, shape index: {}]  }
   0x1   :  { %10 = vsyncpa [#allocation3 + $0x1], 0  ;;  %s1326_s12 = smov 0   ;;  %s1328_s13 = smov 0  }
   0x2   :  { %s1330_s14 = smov 0   ;;  %s1332_s15 = smov 0  }
   0x3   :  { %s1334_s16 = smov 0   ;;  %s1336_s17 = smov 0  }
   0x4 LB: > { %s1015_s18 = sadd.s32 4294967295, %s1300_s17   ;;  %s1016_s19 = sadd.s32 4294967294, %s1300_s17   ;;  %s1300_s17 = sphi %s1336_s17, %s16_s17   ;;  %s1296_s16 = sphi %s1334_s16, %s1629_s16   ;;  %s1292_s15 = sphi %s1332_s15, %s1628_s15   ;;  %s1288_s14 = sphi %s1330_s14, %s1627_s14   ;;  %s1284_s13 = sphi %s1328_s13, %s1626_s13   ;;  %s1280_s12 = sphi %s1326_s12, %s1625_s12  }
   0x5   : > { %s28_s20 = sadd.s32 1, %s1296_s16  ;;  %s110_s21 = sadd.s32 1, %s1288_s14 }
   0x6   : > { %p30_p0 = scmp.ge.s32.totalorder %s28_s20, 2  ;;  %p120_p1 = scmp.ne.s32.totalorder %s1288_s14, %s1284_s13 }
   0x7   : > { %p121_p2 = scmp.eq.s32.totalorder %s1015_s18, 1  ;;  %p126_p3 = scmp.ne.s32.totalorder %s1284_s13, %s1280_s12 }
   0x8   : > { %s1631_s20 = smov (%p30_p0, %s28_s20), 0  ;;  %p127_p5 = scmp.eq.s32.totalorder %s1016_s19, 1 }
   0x9   : > { %p1366_p4 = por %p121_p2, %p120_p1  ;;  %s105_s23 = ssub.s32 %s1296_s16, %s1631_s20 }
   0xa   : > { %p1020_p6 = scmp.ge.s32.totalorder %s1300_s17, 1  ;;  %p108_p7 = scmp.eq.s32.totalorder %s105_s23, 0 }
   0xb   : > { %p1373_p8 = por %p127_p5, %p126_p3  ;;  %p163_p9 = scmp.lt.s32.totalorder %s1300_s17, 3 }
   0xc   : > { %s1379_s25 = scalar_select %p108_p7, %s1288_s14, %s110_s21  }
   0xd   : > { %p164_p10 = pnand %p1020_p6, %p163_p9 }
   0xe   : > { %p191_p11 = scmp.lt.s32.totalorder (!%p164_p10), %s1292_s15, 1  ;;  %s188_s19 = sand.u32 (!%p164_p10), 1, %s1284_s13  }
   0xf   : > { %167 = sbr.rel (%p164_p10) target bundleno = 369 (0x171), region = 32  ;;  %s1303_s5 = smov (!%p164_p10), [#allocation2]  }
  0x10   : > { %s1149_s21 = smul.u32 (!%p164_p10), 72, %s188_s19  ;;  %s1228_s6 = sshll.u32 (!%p164_p10), %s1303_s5, 4  ;;  %s1229_s6 = int_to_ptr.vmem [resolvable:$false] %s1228_s6 }
  0x11   : > { %s1230_s7 = scalar_lea.vmem (!%p164_p10), %s1229_s6, 2304 }
  0x12   : > { %s1553_s26 = scalar_lea.vmem (!%p164_p10), [#allocation2], %s1149_s21 }
  0x13   : > { %s928_s27 = sshll.u32 (!%p164_p10), %s1553_s26, 4  ;;  %s1561_s27 = int_to_ptr.vmem [resolvable:$true] %s928_s27 }
  0x14   : > { %v1212_v0 = vld [vmem:[%s1620_s1] sm:$0xff]   ;;  %v1213_v1 = vld [vmem:[%s1620_s1 + $0x8] sm:$0xff]   ;;  %s192_s30 = scalar_select %p191_p11, %s1292_s15, 1  ;;  %v1215_v2 = vld [vmem:[%s1620_s1 + $0x10] sm:$0xff]   ;;  %v1302_v6 = vmov 0   ;;  %vm251_vm0 = vcmask 130048  }
  0x15   : > { %1093 = vmatprep.subr.bf16.mxu0 %v1212_v0  ;;  %1107 = vmatprep.subr.bf16.mxu1 %v1213_v1  ;;  %v1217_v3 = vld [vmem:[%s1620_s1 + $0x18] sm:$0xff]   ;;  %v755_v4 = vld [vmem:[%s1621_s2] sm:$0xff]  ;;  %v757_v5 = vld [vmem:[%s1621_s2 + $0x10] sm:$0xff]  ;;  %vm446_vm1 = vcmask 1046528   ;;  %vm717_vm2 = vcmask 1045504   ;;  %s1224_s4 = scalar_lea.vmem %s1561_s27, 1152  ;;  %p1231_p1 = scmp.lt.s32.totalorder %s1561_s27, %s1229_s6 }
  0x16   : > { %1094 = vmatpush3.bf16.msra.mxu0 %v1212_v0  ;;  %1108 = vmatpush3.bf16.msra.mxu1 %v1213_v1  ;;  %s1150_s8 = smul.u32 48, %s192_s30  ;;  %v756_v9 = vld [vmem:[%s1621_s2 + $0x8] sm:$0xff]  ;;  %v758_v11 = vld [vmem:[%s1621_s2 + $0x18] sm:$0xff]  ;;  %v759_v13 = vld [vmem:[%s1621_s2 + $0x20] sm:$0xff]  ;;  %s1574_s30 = scalar_lea.sflag [#allocation3], %s188_s19 }
  0x17   : > { %1121 = vmatprep.subr.bf16.mxu0 %v1215_v2  ;;  %1135 = vmatprep.subr.bf16.mxu1 %v1217_v3  ;;  %v760_v14 = vld [vmem:[%s1621_s2 + $0x28] sm:$0xff]  ;;  %v761_v16 = vld [vmem:[%s1621_s2 + $0x30] sm:$0xff]  ;;  %v762_v17 = vld [vmem:[%s1621_s2 + $0x38] sm:$0xff]  ;;  %p1225_p12 = scmp.ne.s32.totalorder %s1561_s27, %s1224_s4  ;;  %p1232_p2 = scmp.lt.s32.totalorder %s1230_s7, %s1224_s4 }
  0x18   : > { %1210 = vset.pattern.permute.xlu0 %v1302_v6  ;;  %s1404_s23 = scalar_lea.vmem %s1619_s0, %s1150_s8  ;;  %1211 = vset.pattern.permute.xlu1 %v1302_v6  ;;  %v763_v19 = vld [vmem:[%s1621_s2 + $0x40] sm:$0xff] }
  0x19   : > { %766 = vperm.xlu0 %1210, %v755_v4   ;;  %v1214_v7 = vld [vmem:[%s1404_s23] sm:$0xff]   ;;  %776 = vperm.xlu1 %1211, %v757_v5   ;;  %v1216_v8 = vld [vmem:[%s1404_s23 + $0x8] sm:$0xff]   ;;  %v1218_v10 = vld [vmem:[%s1404_s23 + $0x10] sm:$0xff]   ;;  %p1226_p13 = pnand %p1225_p12, %p1366_p4  ;;  %p1233_p3 = por %p1232_p2, %p1231_p1 }
  0x1a   : > { %1095 = vmatprep.mubr.msk.bf16.mxu0 %vm251_vm0, %v1214_v7  ;;  %1109 = vmatprep.mubr.msk.bf16.mxu1 %vm251_vm0, %v1214_v7  ;;  %v1219_v12 = vld [vmem:[%s1404_s23 + $0x18] sm:$0xff]   ;;  %v1220_v15 = vld [vmem:[%s1404_s23 + $0x20] sm:$0xff]   ;;  %v1221_v18 = vld [vmem:[%s1404_s23 + $0x28] sm:$0xff]   ;;  %s1151_s23 = smul.u32 1152, %s1292_s15 }
  0x1b   : > { %1096 = vmatmul.mubr.msk.bf16.vlgmr.msra.gmra.mxu0 %vm251_vm0, %v1216_v8  ;;  %1110 = vmatmul.mubr.msk.bf16.vlgmr.msra.gmra.mxu1 %vm251_vm0, %v1216_v8  ;;  %p1227_p0 = pneg %p1226_p13 }
  0x1c   : > { %1122 = vmatpush3.bf16.msra.mxu0 %v1215_v2  ;;  %1136 = vmatpush3.bf16.msra.mxu1 %v1217_v3  ;;  %s1559_s29 = scalar_lea.hbm %s1622_s3, %s1151_s23 }
  0x1d   : > { %1099 = vmatprep.mubr.msk.bf16.mxu0 %vm251_vm0, %v1218_v10  ;;  %1113 = vmatprep.mubr.msk.bf16.mxu1 %vm251_vm0, %v1218_v10  ;;  %p1234_p5 = pnand %p1233_p3, %p1227_p0 }
  0x1e   : > { %771 = vperm.xlu0 %1210, %v756_v9   ;;  %781 = vperm.xlu1 %1211, %v758_v11  }
  0x22   : > { %786 = vperm.xlu0 %1210, %v759_v13   ;;  %791 = vperm.xlu1 %1211, %v760_v14  }
  0x23   : > { %1100 = vmatmul.mubr.msk.bf16.gmra.mxu0 %vm251_vm0, %v1219_v12  ;;  %1114 = vmatmul.mubr.msk.bf16.gmra.mxu1 %vm251_vm0, %v1219_v12 }
  0x24   : > { %1103 = vmatprep.mubr.msk.bf16.mxu0 %vm251_vm0, %v1220_v15  ;;  %1117 = vmatprep.mubr.msk.bf16.mxu1 %vm251_vm0, %v1220_v15 }
  0x26   : > { %796 = vperm.xlu0 %1210, %v761_v16   ;;  %801 = vperm.xlu1 %1211, %v762_v17  }
  0x2a   : > { %806 = vperm.xlu0 %1210, %v763_v19  }
  0x2b   : > { %1104 = vmatmul.mubr.msk.bf16.gmra.mxu0 %vm251_vm0, %v1221_v18  ;;  %1118 = vmatmul.mubr.msk.bf16.gmra.mxu1 %vm251_vm0, %v1221_v18 }
  0x2c   : > { %1123 = vmatprep.mubr.msk.bf16.mxu0 %vm251_vm0, %v1214_v7  ;;  %1137 = vmatprep.mubr.msk.bf16.mxu1 %vm251_vm0, %v1214_v7 }
  0x33   : > { %1124 = vmatmul.mubr.msk.bf16.vlgmr.msra.gmra.mxu0 %vm251_vm0, %v1216_v8  ;;  %1138 = vmatmul.mubr.msk.bf16.vlgmr.msra.gmra.mxu1 %vm251_vm0, %v1216_v8 }
  0x34   : > { %1127 = vmatprep.mubr.msk.bf16.mxu0 %vm251_vm0, %v1218_v10  ;;  %1141 = vmatprep.mubr.msk.bf16.mxu1 %vm251_vm0, %v1218_v10 }
  0x3b   : > { %1128 = vmatmul.mubr.msk.bf16.gmra.mxu0 %vm251_vm0, %v1219_v12  ;;  %1142 = vmatmul.mubr.msk.bf16.gmra.mxu1 %vm251_vm0, %v1219_v12 }
  0x3c   : > { %1131 = vmatprep.mubr.msk.bf16.mxu0 %vm251_vm0, %v1220_v15  ;;  %1145 = vmatprep.mubr.msk.bf16.mxu1 %vm251_vm0, %v1220_v15 }
  0x43   : > { %1132 = vmatmul.mubr.msk.bf16.gmra.mxu0 %vm251_vm0, %v1221_v18  ;;  %1146 = vmatmul.mubr.msk.bf16.gmra.mxu1 %vm251_vm0, %v1221_v18 }
  0x94   : > { %v1480_v0 = vpop.permute.xlu0 %766 }
  0xdb   : > { %v1097_v20 = vpop.f32.mrf.mxu0  ;;  %v1111_v21 = vpop.f32.mrf.mxu1 }
  0xdc   : > { %v450_v47 = vrot.slane %v1111_v21, 1 }
  0xdd   : > { %v304_v22 = vpop.f32.mrf.mxu0  ;;  %v391_v23 = vpop.f32.mrf.mxu1 }
  0xde   : > { %v447_v51 = vrot.slane %v391_v23, 1 }
  0xdf   : > { %v1457_v24 = vpop.f32.mrf.mxu0  ;;  %v1112_v25 = vpop.f32.mrf.mxu1 }
  0xe0   : > { %v452_v48 = vrot.slane %v1112_v25, 1 }
  0xe1   : > { %v307_v26 = vpop.f32.mrf.mxu0  ;;  %v394_v27 = vpop.f32.mrf.mxu1 }
  0xe2   : > { %v448_v44 = vrot.slane %v394_v27, 1  ;;  %v453_v59 = vsel %vm446_vm1, %v450_v47, %v452_v48 }
  0xe3   : > { %v1459_v28 = vpop.f32.mrf.mxu0  ;;  %v1461_v29 = vpop.f32.mrf.mxu1  ;;  %v477_v14 = vadd.f32 %v1097_v20, %v453_v59 }
  0xe4   : > { %v451_v52 = vsel %vm446_vm1, %v448_v44, %v450_v47  ;;  %v449_v55 = vsel %vm446_vm1, %v447_v51, %v448_v44  ;;  %v458_v5 = vrot.slane %v1461_v29, 1 }
  0xe5   : > { %v1463_v30 = vpop.f32.mrf.mxu0  ;;  %v407_v31 = vpop.f32.mrf.mxu1  ;;  %v476_v63 = vadd.f32 %v451_v52, %v307_v26  ;;  %v475_v4 = vadd.f32 %v449_v55, %v304_v22 }
  0xe6   : > { %v454_v56 = vrot.slane %v407_v31, 1  ;;  %v1492_v22 = vpop.permute.xlu1 %776 }
  0xe7   : > { %v1465_v32 = vpop.f32.mrf.mxu0  ;;  %v1467_v33 = vpop.f32.mrf.mxu1 }
  0xe8   : > { %v460_v6 = vrot.slane %v1467_v33, 1  ;;  %v455_v10 = vsel %vm446_vm1, %v452_v48, %v454_v56 }
  0xe9   : > { %v1469_v34 = vpop.f32.mrf.mxu0  ;;  %v410_v35 = vpop.f32.mrf.mxu1  ;;  %v478_v27 = vadd.f32 %v1457_v24, %v455_v10 }
  0xea   : > { %v456_v60 = vrot.slane %v410_v35, 1  ;;  %v461_v29 = vsel %vm446_vm1, %v458_v5, %v460_v6 }
  0xeb   : > { %v1105_v36 = vpop.f32.mrf.mxu0  ;;  %v1119_v37 = vpop.f32.mrf.mxu1 }
  0xec   : > { %v457_v15 = vsel %vm446_vm1, %v454_v56, %v456_v60  ;;  %v459_v21 = vsel %vm446_vm1, %v456_v60, %v458_v5  ;;  %v1500_v36 = vpop.permute.xlu0 %771 }
  0xed   : > { %v1471_v38 = vpop.f32.mrf.mxu0  ;;  %v1473_v39 = vpop.f32.mrf.mxu1  ;;  %v480_v24 = vadd.f32 %v459_v21, %v1469_v34 }
  0xee   : > { %v462_v16 = vrot.slane %v1473_v39, 1 }
  0xef   : > { %v1106_v40 = vpop.f32.mrf.mxu0  ;;  %v1120_v41 = vpop.f32.mrf.mxu1 }
  0xf0   : > { %v463_v44 = vsel %vm446_vm1, %v460_v6, %v462_v16 }
  0xf1   : > { %v339_v42 = vpop.f32.mrf.mxu0  ;;  %v1475_v43 = vpop.f32.mrf.mxu1 }
  0xf2   : > { %v479_v42 = vadd.f32 %v457_v15, %v1463_v30  ;;  %v464_v52 = vrot.slane %v1475_v43, 1 }
  0xf3   : > { %v1125_v45 = vpop.f32.mrf.mxu0  ;;  %v1139_v46 = vpop.f32.mrf.mxu1 }
  0xf4   : > { %v583_v57 = vrot.slane %v1125_v45, 1  ;;  %v719_v11 = vrot.slane %v1139_v46, 2  ;;  %v465_v15 = vsel %vm446_vm1, %v462_v16, %v464_v52 }
  0xf5   : > { %v527_v49 = vpop.f32.mrf.mxu0  ;;  %v662_v50 = vpop.f32.mrf.mxu1 }
  0xf7   : > { %v1126_v53 = vpop.f32.mrf.mxu0  ;;  %v1140_v54 = vpop.f32.mrf.mxu1 }
  0xf8   : > { %v585_v58 = vrot.slane %v1126_v53, 1  ;;  %v721_v7 = vrot.slane %v1140_v54, 2 }
  0xf9   : > { %v529_v61 = vpop.f32.mrf.mxu0  ;;  %v664_v62 = vpop.f32.mrf.mxu1 }
  0xfa   : > { %v586_v1 = vsel %vm446_vm1, %v583_v57, %v585_v58  ;;  %v582_v2 = vrot.slane %v529_v61, 1  ;;  %v718_v3 = vrot.slane %v664_v62, 2  ;;  %v722_v20 = vsel %vm717_vm2, %v719_v11, %v721_v7 }
  0xfb   : > { %v1129_v8 = vpop.f32.mrf.mxu0  ;;  %v1485_v9 = vpop.f32.mrf.mxu1  ;;  %v611_v12 = vadd.f32 %v586_v1, %v476_v63 }
  0xfc   : > { %v584_v13 = vsel %vm446_vm1, %v582_v2, %v583_v57  ;;  %v720_v23 = vsel %vm717_vm2, %v718_v3, %v719_v11  ;;  %v591_v39 = vrot.slane %v1129_v8, 1  ;;  %v727_v30 = vrot.slane %v1485_v9, 2  ;;  %v1518_v57 = vpop.permute.xlu1 %781  ;;  %v1524_v3 = vpop.permute.xlu0 %786 }
  0xfd   : > { %v610_v17 = vadd.f32 %v584_v13, %v475_v4  ;;  %v542_v18 = vpop.f32.mrf.mxu0  ;;  %v677_v19 = vpop.f32.mrf.mxu1  ;;  %v1502_v37 = vadd.f32 %v722_v20, %v611_v12  ;;  %v481_v8 = vadd.f32 %v1459_v28, %v461_v29 }
  0xfe   : > { %v587_v25 = vrot.slane %v542_v18, 1  ;;  %v723_v26 = vrot.slane %v677_v19, 2 }
  0xff   : > { %v1498_v31 = vadd.f32 %v720_v23, %v610_v17  ;;  %v1130_v33 = vpop.f32.mrf.mxu0  ;;  %v1144_v35 = vpop.f32.mrf.mxu1  ;;  %v810_v56 = vmul.f32 %v1500_v36, %v1502_v37 }
 0x100   : > { %v588_v40 = vsel %vm446_vm1, %v585_v58, %v587_v25  ;;  %v593_v41 = vrot.slane %v1130_v33, 1  ;;  %v724_v48 = vsel %vm717_vm2, %v721_v7, %v723_v26  ;;  %v729_v58 = vrot.slane %v1144_v35, 2 }
 0x101   : > { %v612_v45 = vadd.f32 %v588_v40, %v477_v14  ;;  %v545_v46 = vpop.f32.mrf.mxu0  ;;  %v680_v47 = vpop.f32.mrf.mxu1  ;;  %v809_v53 = vmul.f32 %v1480_v0, %v1498_v31  ;;  %v482_v14 = vadd.f32 %v1465_v32, %v463_v44  ;;  %v483_v32 = vadd.f32 %v465_v15, %v1471_v38 }
 0x102   : > { %v594_v49 = vsel %vm446_vm1, %v591_v39, %v593_v41  ;;  %v589_v50 = vrot.slane %v545_v46, 1  ;;  %v725_v51 = vrot.slane %v680_v47, 2  ;;  %v730_v17 = vsel %vm717_vm2, %v727_v30, %v729_v58 }
 0x103   : > { %v1514_v54 = vadd.f32 %v724_v48, %v612_v45  ;;  %v1133_v34 = vpop.f32.mrf.mxu0  ;;  %v1147_v55 = vpop.f32.mrf.mxu1  ;;  %v615_v61 = vadd.f32 %v594_v49, %v480_v24  ;;  %v818_v9 = vadd.f32 %v810_v56, %v809_v53 }
 0x104   : > { %v590_v59 = vsel %vm446_vm1, %v587_v25, %v589_v50  ;;  %v592_v60 = vsel %vm446_vm1, %v589_v50, %v591_v39  ;;  %v726_v4 = vsel %vm717_vm2, %v723_v26, %v725_v51  ;;  %v728_v5 = vsel %vm717_vm2, %v725_v51, %v727_v30 }
 0x105   : > { %v811_v43 = vmul.f32 %v1492_v22, %v1514_v54  ;;  %v613_v62 = vadd.f32 %v590_v59, %v478_v27  ;;  %v614_v63 = vadd.f32 %v592_v60, %v479_v42  ;;  %v558_v1 = vpop.f32.mrf.mxu0  ;;  %v693_v2 = vpop.f32.mrf.mxu1  ;;  %v751_v21 = vadd.f32 %v730_v17, %v615_v61 }
 0x106   : > { %v595_v6 = vrot.slane %v558_v1, 1  ;;  %v731_v7 = vrot.slane %v693_v2, 2  ;;  %v792_v27 = vpop.permute.xlu1 %791  ;;  %v599_v29 = vrot.slane %v1133_v34, 1  ;;  %v735_v42 = vrot.slane %v1147_v55, 2 }
 0x107   : > { %v749_v10 = vadd.f32 %v726_v4, %v613_v62  ;;  %v750_v11 = vadd.f32 %v728_v5, %v614_v63  ;;  %v1134_v12 = vpop.f32.mrf.mxu0  ;;  %v1148_v13 = vpop.f32.mrf.mxu1  ;;  %v819_v19 = vadd.f32 %v818_v9, %v811_v43  ;;  %v814_v45 = vmul.f32 %v792_v27, %v751_v21 }
 0x108   : > { %v596_v18 = vsel %vm446_vm1, %v593_v41, %v595_v6  ;;  %v732_v20 = vsel %vm717_vm2, %v729_v58, %v731_v7  ;;  %v797_v41 = vpop.permute.xlu0 %796 }
 0x109   : > { %v812_v23 = vmul.f32 %v1518_v57, %v749_v10  ;;  %v616_v25 = vadd.f32 %v596_v18, %v481_v8  ;;  %v561_v26 = vpop.f32.mrf.mxu0  ;;  %v696_v28 = vpop.f32.mrf.mxu1  ;;  %v813_v16 = vmul.f32 %v1524_v3, %v750_v11 }
 0x10a   : > { %v597_v33 = vrot.slane %v561_v26, 1  ;;  %v733_v35 = vrot.slane %v696_v28, 2  ;;  %v802_v30 = vpop.permute.xlu1 %801 }
 0x10b   : > { %v820_v39 = vadd.f32 %v819_v19, %v812_v23  ;;  %v752_v40 = vadd.f32 %v732_v20, %v616_v25 }
 0x10c   : > { %v598_v24 = vsel %vm446_vm1, %v595_v6, %v597_v33  ;;  %v600_v44 = vsel %vm446_vm1, %v597_v33, %v599_v29  ;;  %v734_v49 = vsel %vm717_vm2, %v731_v7, %v733_v35  ;;  %v736_v50 = vsel %vm717_vm2, %v733_v35, %v735_v42  ;;  %v807_v55 = vpop.permute.xlu0 %806 }
 0x10d   : > { %v821_v46 = vadd.f32 %v820_v39, %v813_v16  ;;  %v617_v47 = vadd.f32 %v598_v24, %v482_v14  ;;  %v618_v48 = vadd.f32 %v600_v44, %v483_v32  ;;  %v815_v51 = vmul.f32 %v797_v41, %v752_v40 }
 0x10f   : > { %v822_v38 = vadd.f32 %v821_v46, %v814_v45  ;;  %v753_v52 = vadd.f32 %v734_v49, %v617_v47  ;;  %v754_v53 = vadd.f32 %v736_v50, %v618_v48 }
 0x111   : > { %v823_v34 = vadd.f32 %v822_v38, %v815_v51  ;;  %v816_v56 = vmul.f32 %v802_v30, %v753_v52  ;;  %v817_v58 = vmul.f32 %v807_v55, %v754_v53 }
 0x113   : > { %v824_v59 = vadd.f32 %v823_v34, %v816_v56 }
 0x115   : > { %v825_v60 = vadd.f32 %v824_v59, %v817_v58 }
 0x117   : > { %v826_v43 = vrot.slane %v825_v60, 4 }
 0x119   : > { %v827_v61 = vadd.f32 %v826_v43, %v825_v60 }
 0x11b   : > { %v828_v62 = vrot.slane %v827_v61, 2 }
 0x11d   : > { %v829_v63 = vadd.f32 %v828_v62, %v827_v61 }
 0x11f   : > { %v830_v1 = vrot.slane %v829_v63, 1 }
 0x121   : > { %v831_v2 = vadd.f32 %v830_v1, %v829_v63 }
 0x123   : > { %v832_v4 = vmul.f32 0.015625, %v831_v2 }
 0x125   : > { %v833_v5 = vsub.f32 %v1498_v31, %v832_v4  ;;  %v834_v6 = vsub.f32 %v1502_v37, %v832_v4  ;;  %v835_v7 = vsub.f32 %v1514_v54, %v832_v4  ;;  %v836_v8 = vsub.f32 %v749_v10, %v832_v4 }
 0x126   : > { %v837_v9 = vsub.f32 %v750_v11, %v832_v4  ;;  %v838_v15 = vsub.f32 %v751_v21, %v832_v4  ;;  %v839_v23 = vsub.f32 %v752_v40, %v832_v4  ;;  %v840_v28 = vsub.f32 %v753_v52, %v832_v4 }
 0x127   : > { %v842_v12 = vmul.f32 %v833_v5, %v833_v5  ;;  %v843_v13 = vmul.f32 %v834_v6, %v834_v6  ;;  %v844_v14 = vmul.f32 %v835_v7, %v835_v7  ;;  %v845_v17 = vmul.f32 %v836_v8, %v836_v8 }
 0x128   : > { %v846_v25 = vmul.f32 %v837_v9, %v837_v9  ;;  %v847_v37 = vmul.f32 %v838_v15, %v838_v15  ;;  %v841_v11 = vsub.f32 %v754_v53, %v832_v4  ;;  %v848_v29 = vmul.f32 %v839_v23, %v839_v23 }
 0x129   : > { %v851_v18 = vmul.f32 %v842_v12, %v1480_v0  ;;  %v852_v19 = vmul.f32 %v843_v13, %v1500_v36  ;;  %v853_v26 = vmul.f32 %v844_v14, %v1492_v22  ;;  %v854_v54 = vmul.f32 %v845_v17, %v1518_v57 }
 0x12a   : > { %v855_v20 = vmul.f32 %v846_v25, %v1524_v3  ;;  %v849_v33 = vmul.f32 %v840_v28, %v840_v28  ;;  %v856_v35 = vmul.f32 %v847_v37, %v792_v27  ;;  %v850_v32 = vmul.f32 %v841_v11, %v841_v11 }
 0x12b   : > { %v860_v31 = vadd.f32 %v852_v19, %v851_v18  ;;  %v857_v36 = vmul.f32 %v848_v29, %v797_v41 }
 0x12c   : > { %v858_v22 = vmul.f32 %v849_v33, %v802_v30  ;;  %v859_v40 = vmul.f32 %v850_v32, %v807_v55 }
 0x12d   : > { %v861_v10 = vadd.f32 %v860_v31, %v853_v26 }
 0x12f   : > { %v862_v21 = vadd.f32 %v861_v10, %v854_v54 }
 0x131   : > { %v863_v0 = vadd.f32 %v862_v21, %v855_v20 }
 0x133   : > { %v864_v16 = vadd.f32 %v863_v0, %v856_v35 }
 0x135   : > { %v865_v39 = vadd.f32 %v864_v16, %v857_v36 }
 0x137   : > { %v866_v42 = vadd.f32 %v865_v39, %v858_v22 }
 0x139   : > { %v867_v24 = vadd.f32 %v866_v42, %v859_v40 }
 0x13b   : > { %v868_v57 = vrot.slane %v867_v24, 4 }
 0x13d   : > { %v869_v44 = vadd.f32 %v868_v57, %v867_v24 }
 0x13f   : > { %v870_v45 = vrot.slane %v869_v44, 2 }
 0x141   : > { %v871_v46 = vadd.f32 %v870_v45, %v869_v44 }
 0x143   : > { %v872_v3 = vrot.slane %v871_v46, 1 }
 0x145   : > { %v873_v47 = vadd.f32 %v872_v3, %v871_v46 }
 0x147   : > { %v874_v48 = vmul.f32 0.015625, %v873_v47 }
 0x149   : > { %v875_v27 = vadd.f32 1e-05, %v874_v48 }
 0x14b   : > { %1222 = vrsqrt.f32 %v875_v27 }
 0x158   : > { %v1223_v41 = vpop.eup %1222 }
 0x159   : > { %v877_v49 = vmul.f32 %v1223_v41, %v833_v5  ;;  %v878_v50 = vmul.f32 %v1223_v41, %v834_v6  ;;  %v879_v51 = vmul.f32 %v1223_v41, %v835_v7  ;;  %v880_v38 = vmul.f32 %v1223_v41, %v836_v8 }
 0x15a   : > { %v881_v52 = vmul.f32 %v1223_v41, %v837_v9  ;;  %v882_v53 = vmul.f32 %v1223_v41, %v838_v15  ;;  %v883_v30 = vmul.f32 %v1223_v41, %v839_v23  ;;  %v884_v34 = vmul.f32 %v1223_v41, %v840_v28 }
 0x15b   : > { %v885_v56 = vmul.f32 %v1223_v41, %v841_v11  ;;  %v886_v55 = vmul.f32 0.2, %v877_v49  ;;  %v887_v58 = vmul.f32 0.2, %v878_v50  ;;  %v888_v59 = vmul.f32 0.2, %v879_v51 }
 0x15c   : > { %v889_v60 = vmul.f32 0.2, %v880_v38  ;;  %v890_v43 = vmul.f32 0.2, %v881_v52  ;;  %v891_v61 = vmul.f32 0.2, %v882_v53 }
 0x15d   : > { %v892_v62 = vmul.f32 0.2, %v883_v30  ;;  %v893_v63 = vmul.f32 0.2, %v884_v34  ;;  %v894_v1 = vmul.f32 0.2, %v885_v56  ;;  %v895_v2 = vmax.f32 %v877_v49, %v886_v55 }
 0x15e   : > { %v896_v4 = vmax.f32 %v878_v50, %v887_v58  ;;  %v897_v5 = vmax.f32 %v879_v51, %v888_v59  ;;  %v898_v6 = vmax.f32 %v880_v38, %v889_v60  ;;  %v899_v7 = vmax.f32 %v881_v52, %v890_v43 }
 0x15f   : > { %v900_v8 = vmax.f32 %v882_v53, %v891_v61  ;;  %v901_v9 = vmax.f32 %v883_v30, %v892_v62  ;;  %v902_v12 = vmax.f32 %v884_v34, %v893_v63  ;;  %v903_v13 = vmax.f32 %v885_v56, %v894_v1  ;;  %904 = vst [vmem:[%s1553_s26] sm:$0xff] %v895_v2 }
 0x160   : > { %905 = vst [vmem:[%s1553_s26 + $0x8] sm:$0xff] %v896_v4  ;;  %906 = vst [vmem:[%s1553_s26 + $0x10] sm:$0xff] %v897_v5 }
 0x161   : > { %907 = vst [vmem:[%s1553_s26 + $0x18] sm:$0xff] %v898_v6  ;;  %908 = vst [vmem:[%s1553_s26 + $0x20] sm:$0xff] %v899_v7 }
 0x162   : > { %909 = vst [vmem:[%s1553_s26 + $0x28] sm:$0xff] %v900_v8  ;;  %910 = vst [vmem:[%s1553_s26 + $0x30] sm:$0xff] %v901_v9 }
 0x163   : > { %911 = vst [vmem:[%s1553_s26 + $0x38] sm:$0xff] %v902_v12  ;;  %912 = vst [vmem:[%s1553_s26 + $0x40] sm:$0xff] %v903_v13 }
 0x164   : > { %1237 = shalt.err (!%p1234_p5)
}
 0x165   : > { %s1238_s8 = scalar_lea.hbm %s1559_s29, 1152  ;;  %s1242_s11 = scalar_lea.hbm %s1622_s3, 2304 }
 0x166   : > { %p1239_p6 = scmp.ne.s32.totalorder %s1559_s29, %s1238_s8  ;;  %p1243_p10 = scmp.lt.s32.totalorder %s1559_s29, %s1622_s3 }
 0x167   : > { %p1244_p11 = scmp.lt.s32.totalorder %s1242_s11, %s1238_s8 }
 0x168   : > { %p1240_p7 = pnand %p1239_p6, %p1366_p4 }
 0x169   : > { %p1245_p12 = por %p1244_p11, %p1243_p10 }
 0x16a   : > { %p1241_p9 = pneg %p1240_p7 }
 0x16c   : > { %p1246_p13 = pnand %p1245_p12, %p1241_p9 }
 0x16e   : > { %1249 = shalt.err (!%p1246_p13)
}
 0x16f   : > { %s1304_s21 = smov 128   ;;  %s1305_s23 = smov 8  }
 0x170   : > { %1152 = dma.vmem_to_hbm [thread:$0]  (%p1366_p4), %s1561_s27, 1152, %s1559_s29, %s1574_s30, %s1304_s21, %s1304_s21, %s1305_s23  }
 0x171 PF: > { %p1158_p0 = scmp.ge.s32.totalorder %s1300_s17, 2  ;;  %s943_s26 = sand.u32 1, %s1280_s12  }
 0x172   : > { %s944_s15 = scalar_lea.sflag [#allocation3], %s943_s26 }
 0x173   : > { %p1155_p1 = pnand %p1158_p0, %p1373_p8 }
 0x175   : > { %p1156_p2 = pneg %p1155_p1 }
 0x177   : > { %1275 = dma.done.wait (%p1156_p2), %s944_s15, 1152  }
 0x178   : > { %1277 = vsyncadd (%p1156_p2), %s944_s15, 4294966144  ;;  %s16_s17 = sadd.s32 1, %s1300_s17   ;;  %s1625_s12 = smov %s1284_s13 }
 0x179   : > { %p13_p3 = scmp.ge.s32.totalorder %s16_s17, 4   ;;  %s1626_s13 = smov %s1288_s14 }
 0x17a   : > { %s1627_s14 = smov %s1379_s25  ;;  %s1628_s15 = smov %s1296_s16 }
 0x17b   : > { %s1629_s16 = smov %s1631_s20  ;;  %15 = sbr.rel (!%p13_p3) target bundleno = 4 (0x4), region = 73 }
 0x180   :  { %949 = vsyncpa [#allocation3], 1 }
 0x181   :  { %951 = vsyncpa [#allocation3 + $0x1], 1 }

</bundles_post_ra>
